<compile_context>
chip_gen: v6e
topology: v6e:2x2x1
jax: 0.10.0
libtpu: 0.0.40
codegen_flags: <defaults>
</compile_context>

<pallas_src>
import jax
import jax.numpy as jnp
from jax import lax
from jax.experimental import pallas as pl
from jax.experimental.pallas import tpu as pltpu


_SMEM_SPEC = pl.BlockSpec(memory_space=pltpu.MemorySpace.SMEM)
_NEG_BIG = -1e30          # class-dim padding value for mean / logits


# ----------------------------- helpers ---------------------------------------
def _round_up(x, m):
    return ((x + m - 1) // m) * m


def _round_down(x, m):
    return (x // m) * m


def _hw_params(in_dtype):
    """(vmem_limit_bytes, sublane multiple) — generation aware with fallback."""
    try:
        vmem_cap = int(pltpu.get_tpu_info().vmem_capacity_bytes)
    except Exception:
        vmem_cap = 64 * 1024 * 1024                  # conservative (v7x per-TC)
    vmem_limit = min(vmem_cap // 2, 64 * 1024 * 1024)  # 32 MiB on v7x, 64 MiB on v5e/v6e
    sub_mult = max(8, 32 // jnp.dtype(in_dtype).itemsize)   # 8 f32, 16 bf16, 32 i8
    return vmem_limit, sub_mult


def _pick_tile_b(batch, num_classes, in_dtype, prob_dtype, analytic,
                 vmem_limit, sub_mult):
    """Largest batch tile fitting the real VMEM footprint (I/O + temporaries)."""
    in_b = jnp.dtype(in_dtype).itemsize
    out_b = jnp.dtype(prob_dtype).itemsize
    n_in = 2 if analytic else 1
    # double-buffered input tiles + prob output tile:
    io_per_row = 2 * (n_in * num_classes * in_b + num_classes * out_b)
    # live f32 temporaries inside the body (z, exp, prob, corr, w, exp(w), f32
    # upcasts of the inputs) — the dominant term the old formula missed:
    n_tmp = 8 if analytic else 4
    tmp_per_row = n_tmp * num_classes * 4
    per_row = io_per_row + tmp_per_row + 4 * 128      # + small target/nll tiles
    budget = (vmem_limit * 3) // 4                    # headroom for compiler scratch
    tile = budget // max(per_row, 1)
    tile = min(int(tile), 1024)
    tile = max(_round_down(tile, sub_mult), sub_mult)
    # guarantee >=2 grid steps so the "parallel" axis can shard across both
    # TensorCores on v7x (harmless extra step on single-TC v5e/v6e):
    if batch > sub_mult:
        half = max(sub_mult, _round_down((batch + 1) // 2, sub_mult))
        tile = min(tile, half)
    if tile >= batch:
        return batch            # single full block (no divisibility constraint)
    return tile                 # partial last block handled by Pallas clipping


def _row_spec(tile_b, cols):
    return pl.BlockSpec((tile_b, cols), lambda i: (i, 0))


# ----------------------------- kernel bodies ----------------------------------
def _softmax_f32(z):
    z_max = jnp.max(z, axis=-1, keepdims=True)
    e = jnp.exp(z - z_max)
    denom = jnp.sum(e, axis=-1, keepdims=True)
    prob = e * pl.reciprocal(denom, approx=False)     # exact: rows sum to 1
    return prob, z_max, denom


def _analytic_prob(consts_ref, mean_ref, var_ref, prob_ref):
    inv_scale = consts_ref[0]
    corr_coef = consts_ref[2]                         # 1/(2*scale*2), per spec
    mean = mean_ref[...].astype(jnp.float32)          # (TB, C)
    var = var_ref[...].astype(jnp.float32)            # (TB, C)
    z = mean * inv_scale
    prob, _, _ = _softmax_f32(z)
    corr = corr_coef * (prob - 2.0 * prob * prob) * (
        var - jnp.sum(prob * var, axis=-1, keepdims=True))
    prob_ref[...] = (prob + corr).astype(prob_ref.dtype)
    return z, var


def _analytic_nll_rows(consts_ref, z, var, tgt_ref):
    inv_scale2 = consts_ref[1]
    tb, c = z.shape
    col = lax.broadcasted_iota(jnp.int32, (tb, c), 1)
    picked_z = jnp.sum(jnp.where(col == tgt_ref[...], z, 0.0),
                       axis=-1, keepdims=True)        # (TB, 1)
    w = z + var * inv_scale2
    w_max = jnp.max(w, axis=-1, keepdims=True)
    lse = jnp.log(jnp.sum(jnp.exp(w - w_max), axis=-1, keepdims=True)) + w_max
    return lse - picked_z                             # (TB, 1)


def _sampling_prob(consts_ref, logits_ref, prob_ref):
    inv_scale = consts_ref[0]
    z = logits_ref[...].astype(jnp.float32) * inv_scale
    prob, z_max, denom = _softmax_f32(z)
    prob_ref[...] = prob.astype(prob_ref.dtype)
    return z, z_max, denom


def _sampling_nll_rows(z, z_max, denom, tgt_ref):
    tb, c = z.shape
    col = lax.broadcasted_iota(jnp.int32, (tb, c), 1)
    picked_z = jnp.sum(jnp.where(col == tgt_ref[...], z, 0.0),
                       axis=-1, keepdims=True)
    lse = jnp.log(denom) + z_max
    return lse - picked_z


def _make_kernel(mode, nll_kind, batch, tile_b):
    """nll_kind: None (skip), 'per_sample' ((B,1) out), 'partial' (per-tile sum)."""
    analytic = (mode == 'analytic')

    if nll_kind is None:
        if analytic:
            def kernel(consts_ref, mean_ref, var_ref, prob_ref):
                _analytic_prob(consts_ref, mean_ref, var_ref, prob_ref)
        else:
            def kernel(consts_ref, logits_ref, prob_ref):
                _sampling_prob(consts_ref, logits_ref, prob_ref)
        return kernel

    reduce_in_kernel = (nll_kind == 'partial')

    def _write_nll(nll_ref, nll_rows):
        if not reduce_in_kernel:
            nll_ref[...] = nll_rows                   # (TB, 1) per-sample
            return
        # mask rows past the end of the batch (padded last tile may hold
        # garbage / inf; jnp.where is a select so it never propagates):
        row = lax.broadcasted_iota(jnp.int32, (tile_b, 1), 0)
        valid = (pl.program_id(0) * tile_b + row) < batch
        partial = jnp.sum(jnp.where(valid, nll_rows, 0.0))
        # lane+sublane-dense (8,128) block: partial in [0,0], zeros elsewhere.
        sub = lax.broadcasted_iota(jnp.int32, (8, 128), 0)
        lane = lax.broadcasted_iota(jnp.int32, (8, 128), 1)
        nll_ref[...] = jnp.where((sub == 0) & (lane == 0), partial, 0.0)

    if analytic:
        def kernel(consts_ref, mean_ref, var_ref, tgt_ref, prob_ref, nll_ref):
            z, var = _analytic_prob(consts_ref, mean_ref, var_ref, prob_ref)
            _write_nll(nll_ref, _analytic_nll_rows(consts_ref, z, var, tgt_ref))
    else:
        def kernel(consts_ref, logits_ref, tgt_ref, prob_ref, nll_ref):
            z, z_max, denom = _sampling_prob(consts_ref, logits_ref, prob_ref)
            _write_nll(nll_ref, _sampling_nll_rows(z, z_max, denom, tgt_ref))
    return kernel


# ------------------------------- wrapper --------------------------------------
def bayes_softmax(params_scale, logits, targets=None, mode="analytic",
                  return_nll="sum", tile_b=None, prob_dtype=None):
    """JAX/Pallas equivalent of BayesSoftmax.forward."""
    scale = jnp.exp(params_scale.astype(jnp.float32)).reshape(())
    inv_scale = 1.0 / scale
    consts = jnp.stack([inv_scale,
                        inv_scale * inv_scale,
                        0.25 * inv_scale]).astype(jnp.float32)   # 1/(2*s*2)

    analytic = (mode == "analytic")
    if analytic:
        logits_mean, logits_var = logits
        B, C = logits_mean.shape
        in_dtype = logits_mean.dtype
    else:
        B, C = logits.shape
        in_dtype = logits.dtype
    prob_dt = jnp.dtype(prob_dtype) if prob_dtype is not None else jnp.dtype(in_dtype)

    # pad the class dim to a multiple of 128 -> lane-dense vregs, unmasked stores
    C_pad = _round_up(C, 128)
    if C_pad != C:
        pad = ((0, 0), (0, C_pad - C))
        if analytic:
            logits_mean = jnp.pad(logits_mean, pad, constant_values=_NEG_BIG)
            logits_var = jnp.pad(logits_var, pad)                  # zeros
        else:
            logits = jnp.pad(logits, pad, constant_values=_NEG_BIG)

    vmem_limit, sub_mult = _hw_params(in_dtype)
    if tile_b is not None:
        tb = int(tile_b)
    else:
        tb = _pick_tile_b(B, C_pad, in_dtype, prob_dt, analytic, vmem_limit, sub_mult)
    num_tiles = (B + tb - 1) // tb

    if return_nll is None:
        nll_kind = None
    elif return_nll in ("sum", "mean"):
        nll_kind = "partial"
    else:                       # 'none' -> per-sample vector
        nll_kind = "per_sample"

    kernel = _make_kernel(mode, nll_kind, B, tb)

    in_specs = [_SMEM_SPEC]
    inputs = [consts]
    if analytic:
        in_specs += [_row_spec(tb, C_pad), _row_spec(tb, C_pad)]
        inputs += [logits_mean, logits_var]
    else:
        in_specs += [_row_spec(tb, C_pad)]
        inputs += [logits]
    if nll_kind is not None:
        tgt2d = targets.astype(jnp.int32).reshape(-1, 1)
        in_specs += [_row_spec(tb, 1)]
        inputs += [tgt2d]

    out_shape = [jax.ShapeDtypeStruct((B, C_pad), prob_dt)]
    out_specs = [_row_spec(tb, C_pad)]
    if nll_kind == "per_sample":
        out_shape.append(jax.ShapeDtypeStruct((B, 1), jnp.float32))
        out_specs.append(_row_spec(tb, 1))
    elif nll_kind == "partial":
        # one (8,128)-aligned, lane-dense partial block per grid step
        out_shape.append(jax.ShapeDtypeStruct((8 * num_tiles, 128), jnp.float32))
        out_specs.append(pl.BlockSpec((8, 128), lambda i: (i, 0)))

    outs = pl.pallas_call(
        kernel,
        out_shape=tuple(out_shape),
        grid=(num_tiles,),
        in_specs=in_specs,
        out_specs=tuple(out_specs),
        compiler_params=pltpu.CompilerParams(
            dimension_semantics=("parallel",),
            vmem_limit_bytes=vmem_limit),
    )(*inputs)

    prob = outs[0]
    if C_pad != C:
        prob = prob[:, :C]

    if return_nll is None:
        return prob, None
    if nll_kind == "per_sample":
        nll = outs[1][:, 0]                           # only B valid rows written
    else:
        total = jnp.sum(outs[1])                      # sum of per-tile partials
        nll = total / B if return_nll == "mean" else total
    return prob, nll


# ------------------------- pure-JAX reference --------------------------------
def _ref_analytic(params_scale, mean, var, targets, return_nll="sum"):
    scale = jnp.exp(params_scale)
    prob = jax.nn.softmax(mean / scale, axis=-1)
    prob = prob + 1.0 / (2.0 * scale * 2.0) * (prob - 2.0 * prob ** 2) * (
        var - jnp.sum(prob * var, axis=1, keepdims=True))
    B = mean.shape[0]
    nll = -mean[jnp.arange(B), targets] / scale
    nll = nll + jax.scipy.special.logsumexp(mean / scale + var / scale ** 2, axis=1)
    if return_nll == "sum":
        nll = jnp.sum(nll)
    elif return_nll == "mean":
        nll = jnp.mean(nll)
    return prob, nll


def _ref_sampling(params_scale, logits, targets, return_nll="sum"):
    scale = jnp.exp(params_scale)
    z = logits / scale
    prob = jax.nn.softmax(z, axis=-1)
    B = logits.shape[0]
    nll = jax.scipy.special.logsumexp(z, axis=1) - z[jnp.arange(B), targets]
    if return_nll == "sum":
        nll = jnp.sum(nll)
    elif return_nll == "mean":
        nll = jnp.mean(nll)
    return prob, nll


# ------------------------------- demo ----------------------------------------
if __name__ == "__main__":
    # module config: previous layer had `units` inputs, scale factor 1
    units = 32
    scale_factor = 1.0
    params_scale = jnp.log(jnp.array([units * scale_factor], dtype=jnp.float32))

    key = jax.random.PRNGKey(0)
    k1, k2, k3, k4, k5, k6, k7 = jax.random.split(key, 7)

    # ---- 1/2: small aligned case, single tile: B=8, C=128 ----
    B, C = 8, 128
    logits_mean = jax.random.normal(k1, (B, C), dtype=jnp.float32) * 3.0
    logits_var = jax.nn.softplus(jax.random.normal(k2, (B, C), dtype=jnp.float32))
    logits_samp = jax.random.normal(k3, (B, C), dtype=jnp.float32) * 3.0
    targets = jax.random.randint(k4, (B,), 0, C, dtype=jnp.int32)

    prob_a, nll_a = bayes_softmax(params_scale, (logits_mean, logits_var),
                                  targets, mode="analytic", return_nll="sum")
    jax.block_until_ready((prob_a, nll_a))
    prob_a_ref, nll_a_ref = _ref_analytic(params_scale, logits_mean,
                                          logits_var, targets, "sum")
    assert jnp.allclose(prob_a, prob_a_ref, rtol=5e-3, atol=1e-5)
    assert jnp.allclose(nll_a, nll_a_ref, rtol=1e-3, atol=1e-3)

    prob_s, nll_s = bayes_softmax(params_scale, logits_samp, targets,
                                  mode="sampling", return_nll="sum")
    jax.block_until_ready((prob_s, nll_s))
    prob_s_ref, nll_s_ref = _ref_sampling(params_scale, logits_samp, targets, "sum")
    assert jnp.allclose(prob_s, prob_s_ref, rtol=5e-3, atol=1e-5)
    assert jnp.allclose(nll_s, nll_s_ref, rtol=1e-3, atol=1e-3)

    # ---- 3/4: multi-tile with a partial last block (B=20, tile_b=8, grid=3) ----
    B2 = 20
    mean2 = jax.random.normal(k5, (B2, C), dtype=jnp.float32) * 3.0
    var2 = jax.nn.softplus(jax.random.normal(k6, (B2, C), dtype=jnp.float32))
    tgt2 = jax.random.randint(k4, (B2,), 0, C, dtype=jnp.int32)

    prob2, nll2 = bayes_softmax(params_scale, (mean2, var2), tgt2,
                                mode="analytic", return_nll="none", tile_b=8)
    jax.block_until_ready((prob2, nll2))
    prob2_ref, nll2_ref = _ref_analytic(params_scale, mean2, var2, tgt2, "none")
    assert jnp.allclose(prob2, prob2_ref, rtol=5e-3, atol=1e-5)
    assert jnp.allclose(nll2, nll2_ref, rtol=1e-3, atol=1e-3)

    prob3, nll3 = bayes_softmax(params_scale, mean2, tgt2,
                                mode="sampling", return_nll="mean", tile_b=8)
    jax.block_until_ready((prob3, nll3))
    prob3_ref, nll3_ref = _ref_sampling(params_scale, mean2, tgt2, "mean")
    assert jnp.allclose(prob3, prob3_ref, rtol=5e-3, atol=1e-5)
    assert jnp.allclose(nll3, nll3_ref, rtol=1e-3, atol=1e-3)

    # ---- 5: in-kernel partial-sum path with masked padded rows (analytic sum) ----
    prob4, nll4 = bayes_softmax(params_scale, (mean2, var2), tgt2,
                                mode="analytic", return_nll="sum", tile_b=8)
    jax.block_until_ready((prob4, nll4))
    _, nll4_ref = _ref_analytic(params_scale, mean2, var2, tgt2, "sum")
    assert jnp.allclose(nll4, nll4_ref, rtol=1e-3, atol=1e-3)

    # ---- 6: unaligned class dim (C=100 padded to 128), sampling sum ----
    B3, C3 = 12, 100
    logits3 = jax.random.normal(k7, (B3, C3), dtype=jnp.float32) * 3.0
    tgt3 = jax.random.randint(k4, (B3,), 0, C3, dtype=jnp.int32)
    prob5, nll5 = bayes_softmax(params_scale, logits3, tgt3,
                                mode="sampling", return_nll="sum")
    jax.block_until_ready((prob5, nll5))
    prob5_ref, nll5_ref = _ref_sampling(params_scale, logits3, tgt3, "sum")
    assert prob5.shape == (B3, C3)
    assert jnp.allclose(prob5, prob5_ref, rtol=5e-3, atol=1e-5)
    assert jnp.allclose(nll5, nll5_ref, rtol=1e-3, atol=1e-3)

    # ---- 7: return_nll=None fast path (no targets / no NLL output) ----
    prob6, nll6 = bayes_softmax(params_scale, (logits_mean, logits_var),
                                None, mode="analytic", return_nll=None)
    jax.block_until_ready(prob6)
    assert nll6 is None
    assert jnp.allclose(prob6, prob_a_ref, rtol=5e-3, atol=1e-5)

    print("KERNEL_OK")
</pallas_src>

<mosaic_0001>
module attributes {stable_mosaic.version = 11 : i64} {
  func.func @kernel(%arg0: i32, %arg1: memref<3xf32, #tpu.memory_space<smem>>, %arg2: memref<8x128xf32, #tpu.memory_space<vmem>>, %arg3: memref<8x128xf32, #tpu.memory_space<vmem>>, %arg4: memref<8x1xi32, #tpu.memory_space<vmem>>, %arg5: memref<8x128xf32, #tpu.memory_space<vmem>>, %arg6: memref<8x128xf32, #tpu.memory_space<vmem>>) attributes {dimension_semantics = [#tpu.dimension_semantics<parallel>], iteration_bounds = array<i64: 1>, scalar_prefetch = 0 : i64, scratch_operands = 0 : i64, tpu.core_type = #tpu.core_type<tc>, window_params = [{transform_indices = @transform_0, window_bounds = array<i64: 3>}, {transform_indices = @transform_1, window_bounds = array<i64: 8, 128>}, {transform_indices = @transform_2, window_bounds = array<i64: 8, 128>}, {transform_indices = @transform_3, window_bounds = array<i64: 8, 1>}, {transform_indices = @transform_4, window_bounds = array<i64: 8, 128>}, {transform_indices = @transform_5, window_bounds = array<i64: 8, 128>}]} {
    %c0 = arith.constant 0 : index
    %0 = memref.load %arg1[%c0] : memref<3xf32, #tpu.memory_space<smem>>
    %c2 = arith.constant 2 : index
    %1 = memref.load %arg1[%c2] : memref<3xf32, #tpu.memory_space<smem>>
    %c0_0 = arith.constant 0 : index
    %c0_1 = arith.constant 0 : index
    %2 = vector.load %arg2[%c0_0, %c0_1] : memref<8x128xf32, #tpu.memory_space<vmem>>, vector<8x128xf32>
    %c0_2 = arith.constant 0 : index
    %c0_3 = arith.constant 0 : index
    %3 = vector.load %arg3[%c0_2, %c0_3] : memref<8x128xf32, #tpu.memory_space<vmem>>, vector<8x128xf32>
    %4 = vector.broadcast %0 : f32 to vector<8x128xf32>
    %5 = arith.mulf %2, %4 : vector<8x128xf32>
    %cst = arith.constant dense<0xFF800000> : vector<8xf32>
    %6 = vector.multi_reduction <maximumf>, %5, %cst [1] : vector<8x128xf32> to vector<8xf32>
    %7 = vector.shape_cast %6 : vector<8xf32> to vector<8x1xf32>
    %8 = vector.broadcast %7 : vector<8x1xf32> to vector<8x128xf32>
    %9 = arith.subf %5, %8 : vector<8x128xf32>
    %10 = math.exp %9 : vector<8x128xf32>
    %cst_4 = arith.constant dense<0.000000e+00> : vector<8xf32>
    %11 = vector.multi_reduction <add>, %10, %cst_4 [1] : vector<8x128xf32> to vector<8xf32>
    %12 = vector.shape_cast %11 : vector<8xf32> to vector<8x1xf32>
    %13 = tpu.reciprocal %12 : vector<8x1xf32> -> vector<8x1xf32>
    %14 = vector.broadcast %13 : vector<8x1xf32> to vector<8x128xf32>
    %15 = arith.mulf %10, %14 : vector<8x128xf32>
    %cst_5 = arith.constant 2.000000e+00 : f32
    %16 = vector.broadcast %cst_5 : f32 to vector<8x128xf32>
    %17 = arith.mulf %16, %15 : vector<8x128xf32>
    %18 = arith.mulf %17, %15 : vector<8x128xf32>
    %19 = arith.subf %15, %18 : vector<8x128xf32>
    %20 = vector.broadcast %1 : f32 to vector<8x128xf32>
    %21 = arith.mulf %20, %19 : vector<8x128xf32>
    %22 = arith.mulf %15, %3 : vector<8x128xf32>
    %cst_6 = arith.constant dense<0.000000e+00> : vector<8xf32>
    %23 = vector.multi_reduction <add>, %22, %cst_6 [1] : vector<8x128xf32> to vector<8xf32>
    %24 = vector.shape_cast %23 : vector<8xf32> to vector<8x1xf32>
    %25 = vector.broadcast %24 : vector<8x1xf32> to vector<8x128xf32>
    %26 = arith.subf %3, %25 : vector<8x128xf32>
    %27 = arith.mulf %21, %26 : vector<8x128xf32>
    %28 = arith.addf %15, %27 : vector<8x128xf32>
    %c0_7 = arith.constant 0 : index
    %c0_8 = arith.constant 0 : index
    %29 = vector.load %arg5[%c0_7, %c0_8] : memref<8x128xf32, #tpu.memory_space<vmem>>, vector<8x128xf32>
    tpu.vector_store %arg5[%c0_7, %c0_8], %28 {strides = array<i32>} : memref<8x128xf32, #tpu.memory_space<vmem>>, vector<8x128xf32>,
    %c1 = arith.constant 1 : index
    %30 = memref.load %arg1[%c1] : memref<3xf32, #tpu.memory_space<smem>>
    %31 = tpu.iota {dimensions = array<i32: 1>} : vector<8x128xi32>
    %c0_9 = arith.constant 0 : index
    %c0_10 = arith.constant 0 : index
    %32 = vector.load %arg4[%c0_9, %c0_10] : memref<8x1xi32, #tpu.memory_space<vmem>>, vector<8x1xi32>
    %33 = vector.broadcast %32 : vector<8x1xi32> to vector<8x128xi32>
    %34 = arith.cmpi eq, %31, %33 : vector<8x128xi32>
    %cst_11 = arith.constant 0.000000e+00 : f32
    %35 = vector.broadcast %cst_11 : f32 to vector<8x128xf32>
    %36 = arith.select %34, %5, %35 : vector<8x128xi1>, vector<8x128xf32>
    %cst_12 = arith.constant dense<0.000000e+00> : vector<8xf32>
    %37 = vector.multi_reduction <add>, %36, %cst_12 [1] : vector<8x128xf32> to vector<8xf32>
    %38 = vector.shape_cast %37 : vector<8xf32> to vector<8x1xf32>
    %39 = vector.broadcast %30 : f32 to vector<8x128xf32>
    %40 = arith.mulf %3, %39 : vector<8x128xf32>
    %41 = arith.addf %5, %40 : vector<8x128xf32>
    %cst_13 = arith.constant dense<0xFF800000> : vector<8xf32>
    %42 = vector.multi_reduction <maximumf>, %41, %cst_13 [1] : vector<8x128xf32> to vector<8xf32>
    %43 = vector.shape_cast %42 : vector<8xf32> to vector<8x1xf32>
    %44 = vector.broadcast %43 : vector<8x1xf32> to vector<8x128xf32>
    %45 = arith.subf %41, %44 : vector<8x128xf32>
    %46 = math.exp %45 : vector<8x128xf32>
    %cst_14 = arith.constant dense<0.000000e+00> : vector<8xf32>
    %47 = vector.multi_reduction <add>, %46, %cst_14 [1] : vector<8x128xf32> to vector<8xf32>
    %48 = vector.shape_cast %47 : vector<8xf32> to vector<8x1xf32>
    %49 = math.log %48 : vector<8x1xf32>
    %50 = arith.addf %49, %43 : vector<8x1xf32>
    %51 = arith.subf %50, %38 : vector<8x1xf32>
    %52 = tpu.iota {dimensions = array<i32: 0>} : vector<8x1xi32>
    %c8_i32 = arith.constant 8 : i32
    %53 = arith.muli %arg0, %c8_i32 : i32
    %54 = vector.broadcast %53 : i32 to vector<8x1xi32>
    %55 = arith.addi %54, %52 : vector<8x1xi32>
    %c8_i32_15 = arith.constant 8 : i32
    %56 = vector.broadcast %c8_i32_15 : i32 to vector<8x1xi32>
    %57 = arith.cmpi slt, %55, %56 : vector<8x1xi32>
    %cst_16 = arith.constant 0.000000e+00 : f32
    %58 = vector.broadcast %cst_16 : f32 to vector<8x1xf32>
    %59 = arith.select %57, %51, %58 : vector<8x1xi1>, vector<8x1xf32>
    %60 = vector.shape_cast %59 : vector<8x1xf32> to vector<1x8x1xf32>
    %cst_17 = arith.constant dense<0.000000e+00> : vector<1xf32>
    %61 = vector.multi_reduction <add>, %60, %cst_17 [1, 2] : vector<1x8x1xf32> to vector<1xf32>
    %62 = vector.shape_cast %61 : vector<1xf32> to vector<1x1x1xf32>
    %63 = vector.extract %62[0, 0, 0] : f32 from vector<1x1x1xf32>
    %64 = tpu.iota {dimensions = array<i32: 0>} : vector<8x128xi32>
    %65 = tpu.iota {dimensions = array<i32: 1>} : vector<8x128xi32>
    %c0_i32 = arith.constant 0 : i32
    %66 = vector.broadcast %c0_i32 : i32 to vector<8x128xi32>
    %67 = arith.cmpi eq, %64, %66 : vector<8x128xi32>
    %c0_i32_18 = arith.constant 0 : i32
    %68 = vector.broadcast %c0_i32_18 : i32 to vector<8x128xi32>
    %69 = arith.cmpi eq, %65, %68 : vector<8x128xi32>
    %70 = arith.andi %67, %69 : vector<8x128xi1>
    %cst_19 = arith.constant 0.000000e+00 : f32
    %71 = vector.broadcast %63 : f32 to vector<8x128xf32>
    %72 = vector.broadcast %cst_19 : f32 to vector<8x128xf32>
    %73 = arith.select %70, %71, %72 : vector<8x128xi1>, vector<8x128xf32>
    %c0_20 = arith.constant 0 : index
    %c0_21 = arith.constant 0 : index
    %74 = vector.load %arg6[%c0_20, %c0_21] : memref<8x128xf32, #tpu.memory_space<vmem>>, vector<8x128xf32>
    tpu.vector_store %arg6[%c0_20, %c0_21], %73 {strides = array<i32>} : memref<8x128xf32, #tpu.memory_space<vmem>>, vector<8x128xf32>,
    return
  }
  func.func @transform_0(%arg0: i32) -> i32 {
    %c0_i32 = arith.constant 0 : i32
    %c0_i32_0 = arith.constant 0 : i32
    return %c0_i32 : i32
  }
  func.func @transform_1(%arg0: i32) -> (i32, i32) {
    %c0_i32 = arith.constant 0 : i32
    %c0_i32_0 = arith.constant 0 : i32
    return %arg0, %c0_i32 : i32, i32
  }
  func.func @transform_2(%arg0: i32) -> (i32, i32) {
    %c0_i32 = arith.constant 0 : i32
    %c0_i32_0 = arith.constant 0 : i32
    return %arg0, %c0_i32 : i32, i32
  }
  func.func @transform_3(%arg0: i32) -> (i32, i32) {
    %c0_i32 = arith.constant 0 : i32
    %c0_i32_0 = arith.constant 0 : i32
    return %arg0, %c0_i32 : i32, i32
  }
  func.func @transform_4(%arg0: i32) -> (i32, i32) {
    %c0_i32 = arith.constant 0 : i32
    %c0_i32_0 = arith.constant 0 : i32
    return %arg0, %c0_i32 : i32, i32
  }
  func.func @transform_5(%arg0: i32) -> (i32, i32) {
    %c0_i32 = arith.constant 0 : i32
    %c0_i32_0 = arith.constant 0 : i32
    return %arg0, %c0_i32 : i32, i32
  }
}

</mosaic_0001>

<bundles_post_ra>
// kernel: tpu_custom_call.1
= control target key start
LH: loop header
LB: loop body
LE: loop exit
PB: predicated region body
PF: predicated region fallthrough
CT: control target
= control target key end

     0   :  { %11 = vsyncpa [#allocation5], 0  ;;  %s303_s0 = inlined_call_operand.vmem [shape: f32[3], index: 0, kind: input, shape index: {}]   ;;  %s304_s1 = inlined_call_operand.vmem [shape: f32[8,128], index: 1, kind: input, shape index: {}]   ;;  %s305_s2 = inlined_call_operand.hbm [shape: f32[8,128], index: 2, kind: input, shape index: {}]   ;;  %s306_s3 = inlined_call_operand.vmem [shape: s32[8,1], index: 3, kind: input, shape index: {}]   ;;  %s307_s4 = inlined_call_operand.hbm [shape: f32[8,128], index: 4, kind: output, shape index: {0}]   ;;  %s308_s5 = inlined_call_operand.hbm [shape: f32[8,128], index: 5, kind: output, shape index: {1}]  }
   0x1   :  { %12 = vsyncpa [#allocation3], 0 }
   0x2   :  { %13 = vsyncpa [#allocation4], 0 }
   0x3   :  { %14 = vsyncpa [#allocation9], 0  ;;  %s21_s20 = sshll.u32 %s303_s0, 4  ;;  %s22_s20 = int_to_ptr.vmem [resolvable:$true] %s21_s20 }
   0x4   :  { %s170_s21 = scalar_lea.vmem %s22_s20, 16  ;;  %p175_p1 = scmp.lt.s32.totalorder %s22_s20, %s22_s20 }
   0x5   :  { %p171_p0 = scmp.ne.s32.totalorder %s22_s20, %s170_s21  ;;  %p176_p2 = scmp.lt.s32.totalorder %s170_s21, %s170_s21 }
   0x7   :  { %p177_p3 = por %p176_p2, %p175_p1 }
   0x9   :  { %p178_p4 = pnand %p177_p3, %p171_p0 }
   0xb   :  { %181 = shalt.err (!%p178_p4)
}
   0xc   :  { %s250_s22 = smov [#allocation2]   ;;  %s251_s23 = smov [#allocation6]  }
   0xd   :  { %24 = dma.vmem_to_smem %s22_s20, 16, %s250_s22, [#allocation5]  }
   0xe   :  { %s33_s24 = sshll.u32 %s251_s23, 4  ;;  %s34_s24 = int_to_ptr.vmem [resolvable:$true] %s33_s24 }
   0xf   :  { %s190_s25 = scalar_lea.vmem %s34_s24, 128  ;;  %p195_p6 = scmp.lt.s32.totalorder %s34_s24, %s34_s24 }
  0x10   :  { %p191_p5 = scmp.ne.s32.totalorder %s34_s24, %s190_s25  ;;  %p196_p7 = scmp.lt.s32.totalorder %s190_s25, %s190_s25 }
  0x12   :  { %p197_p8 = por %p196_p7, %p195_p6 }
  0x14   :  { %p198_p9 = pnand %p197_p8, %p191_p5 }
  0x16   :  { %201 = shalt.err (!%p198_p9)
}
  0x17   :  { %36 = dma.hbm_to_vmem [thread:$0]  %s305_s2, 128, %s34_s24, [#allocation3]  }
  0x18   :  { %242 = dma.done.wait [#allocation5], 16  }
  0x19   :  { %243 = vsyncadd [#allocation5], 4294967280 }
  0x1a   :  { %244 = dma.done.wait [#allocation3], 128  }
  0x1b   :  { %245 = vsyncadd [#allocation3], 4294967168 }
  0x1c   :  { %45 = sfence }
  0x1d   :  { %s46_s27 = sld [smem:[#allocation2]]  ;;  %v252_v0 = vmov 0   ;;  %v48_v1 = vld [vmem:[%s304_s1] sm:$0xff]  ;;  %v74_v15 = vlaneseq  ;;  %vm105_vm1 = vcmask 7168  }
  0x1e   :  { %s153_s28 = sld [smem:[#allocation2 + $0x1]]  ;;  %161 = vset.pattern.permute.xlu0 %v252_v0  ;;  %v49_v2 = vld [vmem:[#allocation6] sm:$0xff] }
  0x1f   :  { %v76_v8 = vld [vmem:[%s306_s3] sm:$0xff]  ;;  %v75_v16 = vand.u32 127, %v74_v15  ;;  %s152_s1 = sld [smem:[#allocation2 + $0x2]]  ;;  %s253_s3 = smov [#allocation7]  }
  0x20   :  { %s128_s7 = sshll.u32 %s253_s3, 4  ;;  %s129_s7 = int_to_ptr.vmem [resolvable:$true] %s128_s7 }
  0x21   :  { %s202_s8 = scalar_lea.vmem %s129_s7, 128  ;;  %p207_p11 = scmp.lt.s32.totalorder %s129_s7, %s129_s7 }
  0x22   :  { %p203_p10 = scmp.ne.s32.totalorder %s129_s7, %s202_s8  ;;  %p208_p12 = scmp.lt.s32.totalorder %s202_s8, %s202_s8 }
  0x23   :  { %v50_v3 = vstv %s46_s27 }
  0x24   :  { %v51_v4 = vmul.f32 %v50_v3, %v48_v1  ;;  %v84_v5 = vstv %s153_s28  ;;  %p209_p13 = por %p208_p12, %p207_p11 }
  0x25   :  { %v85_v6 = vmul.f32 %v84_v5, %v49_v2  ;;  %v64_v38 = vstv %s152_s1 }
  0x26   :  { %52 = vmax.xlane.f32.xlu1 %v51_v4  ;;  %p210_p0 = pnand %p209_p13, %p203_p10 }
  0x27   :  { %v86_v7 = vadd.f32 %v85_v6, %v51_v4 }
  0x29   :  { %87 = vmax.xlane.f32.xlu0 %v86_v7 }
  0x3f   :  { %78 = vperm.xlu0 %161, %v76_v8  }
  0xaf   :  { %v53_v10 = vpop.xlane.xlu1 %52 }
  0xb0   :  { %v54_v13 = vsub.f32 %v51_v4, %v53_v10 }
  0xb2   :  { %v88_v9 = vpop.xlane.xlu0 %87  ;;  %v55_v14 = vmul.f32 1.442695, %v54_v13 }
  0xb3   :  { %v89_v11 = vsub.f32 %v86_v7, %v88_v9 }
  0xb5   :  { %v90_v12 = vmul.f32 1.442695, %v89_v11 }
  0xb7   :  { %162 = vpow2.f32 %v90_v12 }
  0xb8   :  { %164 = vpow2.f32 %v55_v14 }
  0xba   :  { %v79_v17 = vpop.permute.xlu0 %78 }
  0xbb   :  { %vm80_vm0 = vcmp.eq.s32.totalorder %v75_v16, %v79_v17 }
  0xbc   :  { %v81_v19 = vsel %vm80_vm0, %v51_v4, 0.0 }
  0xc4   :  { %v163_v18 = vpop.eup %162 }
  0xc5   :  { %92 = vadd.xlane.f32.xlu1 %v163_v18  ;;  %v165_v20 = vpop.eup %164 }
  0xc9   :  { %82 = vadd.xlane.f32.xlu1 %v81_v19 }
  0xcd   :  { %57 = vadd.xlane.f32.xlu1 %v165_v20 }
 0x14e   :  { %v93_v21 = vpop.xlane.xlu1 %92 }
 0x14f   :  { %166 = vlog2.f32 %v93_v21 }
 0x152   :  { %v83_v22 = vpop.xlane.xlu1 %82 }
 0x156   :  { %v58_v23 = vpop.xlane.xlu1 %57 }
 0x157   :  { %168 = vrcp.f32 %v58_v23 }
 0x15c   :  { %v167_v24 = vpop.eup %166 }
 0x15d   :  { %v95_v25 = vmul.f32 0.6931472, %v167_v24 }
 0x15f   :  { %v96_v26 = vadd.f32 %v95_v25, %v88_v9 }
 0x161   :  { %v97_v27 = vsub.f32 %v96_v26, %v83_v22 }
 0x163   :  { %v106_v28 = vsel %vm105_vm1, %v97_v27, 0.0 }
 0x164   :  { %v169_v29 = vpop.eup %168  ;;  %107 = vadd.xlane.f32.xlu1 %v106_v28 }
 0x165   :  { %v60_v30 = vmul.f32 %v169_v29, %v165_v20 }
 0x167   :  { %v66_v31 = vmul.f32 %v60_v30, %v49_v2  ;;  %v61_v32 = vmul.f32 2.0, %v60_v30 }
 0x169   :  { %67 = vadd.xlane.f32.xlu1 %v66_v31  ;;  %v62_v33 = vmul.f32 %v61_v32, %v60_v30 }
 0x16b   :  { %v63_v36 = vsub.f32 %v60_v30, %v62_v33 }
 0x16d   :  { %v65_v41 = vmul.f32 %v64_v38, %v63_v36 }
 0x1ed   :  { %v108_v34 = vpop.xlane.xlu1 %107 }
 0x1ee   :  { %v109_v35 = vrot.slane %v108_v34, 4 }
 0x1f0   :  { %v110_v37 = vadd.f32 %v109_v35, %v108_v34 }
 0x1f2   :  { %v111_v39 = vrot.slane %v110_v37, 2  ;;  %v68_v40 = vpop.xlane.xlu1 %67 }
 0x1f3   :  { %v69_v42 = vsub.f32 %v49_v2, %v68_v40 }
 0x1f4   :  { %v112_v43 = vadd.f32 %v111_v39, %v110_v37 }
 0x1f5   :  { %v70_v44 = vmul.f32 %v69_v42, %v65_v41 }
 0x1f6   :  { %v113_v45 = vrot.slane %v112_v43, 1 }
 0x1f7   :  { %v71_v46 = vadd.f32 %v70_v44, %v60_v30 }
 0x1f8   :  { %v114_v47 = vadd.f32 %v113_v45, %v112_v43 }
 0x1f9   :  { %72 = vst [vmem:[#allocation7] sm:$0xff] %v71_v46 }
 0x1fa   :  { %154 = vpush %v114_v47 }
 0x1fb   :  { %213 = shalt.err (!%p210_p0)
}
 0x1fc   :  { %131 = dma.vmem_to_hbm [thread:$0]  %s129_s7, 128, %s307_s4, [#allocation4]   ;;  %v99_v48 = vshrl.u32 %v74_v15, 7  ;;  %vm117_vm3 = vcmp.eq.s32.totalorder %v75_v16, 0 }
 0x1fd   :  { %s254_s11 = smov [#allocation8]  }
 0x1fe   :  { %vm116_vm2 = vcmp.eq.s32.totalorder %v99_v48, 0  ;;  %s138_s12 = sshll.u32 %s254_s11, 4  ;;  %s139_s12 = int_to_ptr.vmem [resolvable:$true] %s138_s12 }
 0x1ff   :  { %vm118_vm4 = vmand %vm116_vm2, %vm117_vm3  ;;  %s222_s14 = scalar_lea.vmem %s139_s12, 128  ;;  %p227_p2 = scmp.lt.s32.totalorder %s139_s12, %s139_s12 }
 0x200   :  { %p223_p1 = scmp.ne.s32.totalorder %s139_s12, %s222_s14  ;;  %p228_p3 = scmp.lt.s32.totalorder %s222_s14, %s222_s14 }
 0x202   :  { %p229_p4 = por %p228_p3, %p227_p2 }
 0x204   :  { %p230_p5 = pnand %p229_p4, %p223_p1 }
 0x22b   :  { %s155_s13 = spop %154 }
 0x22c   :  { %v119_v49 = vstv %s155_s13 }
 0x22d   :  { %v120_v50 = vsel %vm118_vm4, %v119_v49, 0.0 }
 0x22e   :  { %121 = vst [vmem:[#allocation8] sm:$0xff] %v120_v50 }
 0x22f   :  { %233 = shalt.err (!%p230_p5)
}
 0x230   :  { %141 = dma.vmem_to_hbm [thread:$0]  %s139_s12, 128, %s308_s5, [#allocation9]  }
 0x231   :  { %246 = dma.done.wait [#allocation4], 128  }
 0x232   :  { %247 = vsyncadd [#allocation4], 4294967168 }
 0x233   :  { %248 = dma.done.wait [#allocation9], 128  }
 0x234   :  { %249 = vsyncadd [#allocation9], 4294967168 }
 0x235   :  { %148 = vsyncpa [#allocation3], 1 }
 0x236   :  { %149 = vsyncpa [#allocation4], 1 }
 0x237   :  { %150 = vsyncpa [#allocation9], 1 }
 0x238   :  { %151 = vsyncpa [#allocation5], 1 }

</bundles_post_ra>
